<compile_context>
chip_gen: v5e
topology: v5e:2x2
jax: 0.10.0
libtpu: 0.0.40
codegen_flags: <defaults>
</compile_context>

<pallas_src>
import jax
import jax.numpy as jnp
from jax.experimental import pallas as pl
from jax.experimental.pallas import tpu as pltpu

N_HIDDEN = 30


def _sigmoid_eup(z):
    # 1 / (1 + exp(-z)) with exp + reciprocal both on the EUP slot.
    return pl.reciprocal(1.0 + jnp.exp(-z), approx=True)


def mlp_kernel(x_ref, w1_ref, b1_ref, w2_ref, b2_ref, w3_ref, b3_ref, o_ref):
    # x_ref : (1, TB)   batch on the lane axis
    # w1_ref: (H, 1)    b1_ref: (H, 1)
    # w2_ref: (H, H)    b2_ref: (H, 1)
    # w3_ref: (1, H)    b3_ref: (1, 1)
    # o_ref : (1, TB)
    x = x_ref[...]                                             # (1, TB)

    # Layer 1: K=1 rank-1 layer -> VPU broadcast multiply (no MXU pass).
    z1 = w1_ref[...] * x + b1_ref[...]                         # (H, TB)
    h1 = _sigmoid_eup(z1)

    # Layer 2: (H, H) @ (H, TB) on the MXU with f32 accumulation.
    z2 = jnp.dot(w2_ref[...], h1,
                 preferred_element_type=jnp.float32) + b2_ref[...]
    h2 = _sigmoid_eup(z2)                                      # (H, TB)

    # Layer 3: (1, H) @ (H, TB) -> lane-dense (1, TB) output (no activation).
    out = jnp.dot(w3_ref[...], h2,
                  preferred_element_type=jnp.float32) + b3_ref[...]
    o_ref[...] = out.astype(o_ref.dtype)


def net_forward(x, params, *, tile_b=512):
    """x: (N, 1) float32.  params: PyTorch-layout (out,in) weights, (out,1) biases."""
    w1, b1, w2, b2, w3, b3 = (
        params["w1"], params["b1"], params["w2"],
        params["b2"], params["w3"], params["b3"],
    )
    n = x.shape[0]

    # Transposed layout: batch on the lane axis.
    xt = x.reshape(1, n)

    # pl.cdiv grid + zero padding instead of a divisibility assert.
    n_blocks = pl.cdiv(n, tile_b)
    n_pad = n_blocks * tile_b
    if n_pad != n:
        xt = jnp.pad(xt, ((0, 0), (0, n_pad - n)))

    # Weights/biases are tiny; full-array blocks with constant index_maps so
    # they are loaded once and stay resident in VMEM across grid steps.
    full = lambda arr: pl.BlockSpec(arr.shape, lambda i: (0, 0))

    out_t = pl.pallas_call(
        mlp_kernel,
        out_shape=jax.ShapeDtypeStruct((1, n_pad), jnp.float32),
        grid_spec=pltpu.PrefetchScalarGridSpec(
            num_scalar_prefetch=0,
            grid=(n_blocks,),
            in_specs=[
                pl.BlockSpec((1, tile_b), lambda i: (0, i)),   # x   (1, N)
                full(w1),                                      # w1  (H, 1)
                full(b1),                                      # b1  (H, 1)
                full(w2),                                      # w2  (H, H)
                full(b2),                                      # b2  (H, 1)
                full(w3),                                      # w3  (1, H)
                full(b3),                                      # b3  (1, 1)
            ],
            out_specs=pl.BlockSpec((1, tile_b), lambda i: (0, i)),
        ),
        compiler_params=pltpu.CompilerParams(
            dimension_semantics=("parallel",)),
    )(xt, w1, b1, w2, b2, w3, b3)

    return out_t[:, :n].reshape(n, 1)


def init_params(key, n_hidden=N_HIDDEN):
    """Deterministic init mimicking nn.Linear's U(-1/sqrt(fan_in), 1/sqrt(fan_in)).

    Weights are stored in PyTorch's (out_features, in_features) layout,
    biases as (out_features, 1) columns (batch-on-lane convention).
    """
    ks = jax.random.split(key, 6)

    def lin(kw, kb, fan_in, fan_out):
        bound = 1.0 / jnp.sqrt(jnp.float32(fan_in))
        w = jax.random.uniform(kw, (fan_out, fan_in), jnp.float32, -bound, bound)
        b = jax.random.uniform(kb, (fan_out, 1), jnp.float32, -bound, bound)
        return w, b

    w1, b1 = lin(ks[0], ks[1], 1, n_hidden)
    w2, b2 = lin(ks[2], ks[3], n_hidden, n_hidden)
    w3, b3 = lin(ks[4], ks[5], n_hidden, 1)
    return dict(w1=w1, b1=b1, w2=w2, b2=b2, w3=w3, b3=b3)


def net_forward_ref(x, p):
    # Standard (batch, features) reference matching nn.Linear semantics.
    h1 = jax.nn.sigmoid(x @ p["w1"].T + p["b1"].T)
    h2 = jax.nn.sigmoid(h1 @ p["w2"].T + p["b2"].T)
    return h2 @ p["w3"].T + p["b3"].T


if __name__ == "__main__":
    key = jax.random.PRNGKey(0)
    k_params, k_x = jax.random.split(key)

    params = init_params(k_params)

    # Small, non-multiple-of-tile batch to exercise the cdiv + padding path.
    batch = 300
    x = jax.random.normal(k_x, (batch, 1), jnp.float32)

    y = net_forward(x, params, tile_b=128)   # grid = 3 (>= 2 for v7x megacore)
    y = jax.block_until_ready(y)

    y_ref = net_forward_ref(x, params)
    assert y.shape == (batch, 1)
    # Tolerance loosened slightly vs f32-exact because of the EUP
    # approximate-reciprocal sigmoid.
    assert jnp.allclose(y, y_ref, atol=2e-3, rtol=2e-3), (
        float(jnp.max(jnp.abs(y - y_ref))))

    print("KERNEL_OK")
</pallas_src>

<mosaic_0001>
module attributes {stable_mosaic.version = 11 : i64} {
  func.func @mlp_kernel(%arg0: i32, %arg1: memref<1x128xf32, #tpu.memory_space<vmem>>, %arg2: memref<30x1xf32, #tpu.memory_space<vmem>>, %arg3: memref<30x1xf32, #tpu.memory_space<vmem>>, %arg4: memref<30x30xf32, #tpu.memory_space<vmem>>, %arg5: memref<30x1xf32, #tpu.memory_space<vmem>>, %arg6: memref<1x30xf32, #tpu.memory_space<vmem>>, %arg7: memref<1x1xf32, #tpu.memory_space<vmem>>, %arg8: memref<1x128xf32, #tpu.memory_space<vmem>>) attributes {dimension_semantics = [#tpu.dimension_semantics<parallel>], iteration_bounds = array<i64: 3>, scalar_prefetch = 0 : i64, scratch_operands = 0 : i64, tpu.core_type = #tpu.core_type<tc>, window_params = [{transform_indices = @transform_0, window_bounds = array<i64: 1, 128>}, {pipeline_mode = #tpu.pipeline_mode<synchronous>, transform_indices = @transform_1, window_bounds = array<i64: 30, 1>}, {pipeline_mode = #tpu.pipeline_mode<synchronous>, transform_indices = @transform_2, window_bounds = array<i64: 30, 1>}, {pipeline_mode = #tpu.pipeline_mode<synchronous>, transform_indices = @transform_3, window_bounds = array<i64: 30, 30>}, {pipeline_mode = #tpu.pipeline_mode<synchronous>, transform_indices = @transform_4, window_bounds = array<i64: 30, 1>}, {pipeline_mode = #tpu.pipeline_mode<synchronous>, transform_indices = @transform_5, window_bounds = array<i64: 1, 30>}, {pipeline_mode = #tpu.pipeline_mode<synchronous>, transform_indices = @transform_6, window_bounds = array<i64: 1, 1>}, {transform_indices = @transform_7, window_bounds = array<i64: 1, 128>}]} {
    %c0 = arith.constant 0 : index
    %c0_0 = arith.constant 0 : index
    %0 = vector.load %arg1[%c0, %c0_0] : memref<1x128xf32, #tpu.memory_space<vmem>>, vector<1x128xf32>
    %c0_1 = arith.constant 0 : index
    %c0_2 = arith.constant 0 : index
    %1 = vector.load %arg2[%c0_1, %c0_2] : memref<30x1xf32, #tpu.memory_space<vmem>>, vector<30x1xf32>
    %2 = vector.broadcast %1 : vector<30x1xf32> to vector<30x128xf32>
    %3 = vector.broadcast %0 : vector<1x128xf32> to vector<30x128xf32>
    %4 = arith.mulf %2, %3 : vector<30x128xf32>
    %c0_3 = arith.constant 0 : index
    %c0_4 = arith.constant 0 : index
    %5 = vector.load %arg3[%c0_3, %c0_4] : memref<30x1xf32, #tpu.memory_space<vmem>>, vector<30x1xf32>
    %6 = vector.broadcast %5 : vector<30x1xf32> to vector<30x128xf32>
    %7 = arith.addf %4, %6 : vector<30x128xf32>
    %cst = arith.constant 0.000000e+00 : f32
    %8 = vector.broadcast %cst : f32 to vector<30x128xf32>
    %9 = arith.subf %8, %7 : vector<30x128xf32>
    %10 = math.exp %9 : vector<30x128xf32>
    %cst_5 = arith.constant 1.000000e+00 : f32
    %11 = vector.broadcast %cst_5 : f32 to vector<30x128xf32>
    %12 = arith.addf %11, %10 : vector<30x128xf32>
    %13 = tpu.reciprocal %12 {approx = true} : vector<30x128xf32> -> vector<30x128xf32>
    %c0_6 = arith.constant 0 : index
    %c0_7 = arith.constant 0 : index
    %14 = vector.load %arg4[%c0_6, %c0_7] : memref<30x30xf32, #tpu.memory_space<vmem>>, vector<30x30xf32>
    %cst_8 = arith.constant dense<0.000000e+00> : vector<30x128xf32>
    %15 = tpu.matmul %14, %13, %cst_8 {dimension_numbers = #tpu.dot_dimension_numbers<[1], [0], [0], [1], [0, 0, 1, 1], [], []>} : vector<30x30xf32>, vector<30x128xf32>, vector<30x128xf32> -> vector<30x128xf32>
    %c0_9 = arith.constant 0 : index
    %c0_10 = arith.constant 0 : index
    %16 = vector.load %arg5[%c0_9, %c0_10] : memref<30x1xf32, #tpu.memory_space<vmem>>, vector<30x1xf32>
    %17 = vector.broadcast %16 : vector<30x1xf32> to vector<30x128xf32>
    %18 = arith.addf %15, %17 : vector<30x128xf32>
    %cst_11 = arith.constant 0.000000e+00 : f32
    %19 = vector.broadcast %cst_11 : f32 to vector<30x128xf32>
    %20 = arith.subf %19, %18 : vector<30x128xf32>
    %21 = math.exp %20 : vector<30x128xf32>
    %cst_12 = arith.constant 1.000000e+00 : f32
    %22 = vector.broadcast %cst_12 : f32 to vector<30x128xf32>
    %23 = arith.addf %22, %21 : vector<30x128xf32>
    %24 = tpu.reciprocal %23 {approx = true} : vector<30x128xf32> -> vector<30x128xf32>
    %c0_13 = arith.constant 0 : index
    %c0_14 = arith.constant 0 : index
    %25 = vector.load %arg6[%c0_13, %c0_14] : memref<1x30xf32, #tpu.memory_space<vmem>>, vector<1x30xf32>
    %cst_15 = arith.constant dense<0.000000e+00> : vector<1x128xf32>
    %26 = tpu.matmul %25, %24, %cst_15 {dimension_numbers = #tpu.dot_dimension_numbers<[1], [0], [0], [1], [0, 0, 1, 1], [], []>} : vector<1x30xf32>, vector<30x128xf32>, vector<1x128xf32> -> vector<1x128xf32>
    %c0_16 = arith.constant 0 : index
    %c0_17 = arith.constant 0 : index
    %27 = vector.load %arg7[%c0_16, %c0_17] : memref<1x1xf32, #tpu.memory_space<vmem>>, vector<1x1xf32>
    %28 = vector.broadcast %27 : vector<1x1xf32> to vector<1x128xf32>
    %29 = arith.addf %26, %28 : vector<1x128xf32>
    %c0_18 = arith.constant 0 : index
    %c0_19 = arith.constant 0 : index
    %30 = vector.load %arg8[%c0_18, %c0_19] : memref<1x128xf32, #tpu.memory_space<vmem>>, vector<1x128xf32>
    tpu.vector_store %arg8[%c0_18, %c0_19], %29 {strides = array<i32>} : memref<1x128xf32, #tpu.memory_space<vmem>>, vector<1x128xf32>,
    return
  }
  func.func @transform_0(%arg0: i32) -> (i32, i32) {
    %c0_i32 = arith.constant 0 : i32
    %c0_i32_0 = arith.constant 0 : i32
    return %c0_i32, %arg0 : i32, i32
  }
  func.func @transform_1(%arg0: i32) -> (i32, i32) {
    %c0_i32 = arith.constant 0 : i32
    %c0_i32_0 = arith.constant 0 : i32
    %c0_i32_1 = arith.constant 0 : i32
    return %c0_i32, %c0_i32_0 : i32, i32
  }
  func.func @transform_2(%arg0: i32) -> (i32, i32) {
    %c0_i32 = arith.constant 0 : i32
    %c0_i32_0 = arith.constant 0 : i32
    %c0_i32_1 = arith.constant 0 : i32
    return %c0_i32, %c0_i32_0 : i32, i32
  }
  func.func @transform_3(%arg0: i32) -> (i32, i32) {
    %c0_i32 = arith.constant 0 : i32
    %c0_i32_0 = arith.constant 0 : i32
    %c0_i32_1 = arith.constant 0 : i32
    return %c0_i32, %c0_i32_0 : i32, i32
  }
  func.func @transform_4(%arg0: i32) -> (i32, i32) {
    %c0_i32 = arith.constant 0 : i32
    %c0_i32_0 = arith.constant 0 : i32
    %c0_i32_1 = arith.constant 0 : i32
    return %c0_i32, %c0_i32_0 : i32, i32
  }
  func.func @transform_5(%arg0: i32) -> (i32, i32) {
    %c0_i32 = arith.constant 0 : i32
    %c0_i32_0 = arith.constant 0 : i32
    %c0_i32_1 = arith.constant 0 : i32
    return %c0_i32, %c0_i32_0 : i32, i32
  }
  func.func @transform_6(%arg0: i32) -> (i32, i32) {
    %c0_i32 = arith.constant 0 : i32
    %c0_i32_0 = arith.constant 0 : i32
    %c0_i32_1 = arith.constant 0 : i32
    return %c0_i32, %c0_i32_0 : i32, i32
  }
  func.func @transform_7(%arg0: i32) -> (i32, i32) {
    %c0_i32 = arith.constant 0 : i32
    %c0_i32_0 = arith.constant 0 : i32
    return %c0_i32, %arg0 : i32, i32
  }
}

</mosaic_0001>

<bundles_post_ra>
// kernel: tpu_custom_call.1
= control target key start
LH: loop header
LB: loop body
LE: loop exit
PB: predicated region body
PF: predicated region fallthrough
CT: control target
= control target key end

     0   :  { %s896_s0 = inlined_call_operand.vmem [shape: f32[1,384], index: 0, kind: input, shape index: {}]   ;;  %s897_s1 = inlined_call_operand.vmem [shape: f32[30,1], index: 1, kind: input, shape index: {}]   ;;  %s898_s2 = inlined_call_operand.vmem [shape: f32[30,1], index: 2, kind: input, shape index: {}]   ;;  %s899_s3 = inlined_call_operand.vmem [shape: f32[30,30], index: 3, kind: input, shape index: {}]   ;;  %s900_s4 = inlined_call_operand.vmem [shape: f32[30,1], index: 4, kind: input, shape index: {}]   ;;  %s901_s5 = inlined_call_operand.vmem [shape: f32[1,30], index: 5, kind: input, shape index: {}]   ;;  %s902_s6 = inlined_call_operand.<no memory space> [shape: f32[1,1], index: 6, kind: input, shape index: {}]   ;;  %s903_s7 = inlined_call_operand.hbm [shape: f32[1,384], index: 7, kind: output, shape index: {}]  }
   0x1   :  { %v12_v0 = vstv %s902_s6 }
   0x2   :  { %13 = vst [vmem:[#allocation2] sm:$0x1] %v12_v0 }
   0x3   :  { %14 = vsyncpa [#allocation4], 0 }
   0x4   :  { %16 = vsyncpa [#allocation4 + $0x1], 0  ;;  %s751_s26 = smov 0   ;;  %s753_s27 = smov 0  }
   0x5   :  { %s755_s28 = smov 0   ;;  %s757_s29 = smov 0  }
   0x6 LB: > { %s772_s6 = sadd.s32 4294967295, %s705_s29   ;;  %s546_s30 = sadd.s32 4294967294, %s705_s29   ;;  %s705_s29 = sphi %s757_s29, %s909_s29   ;;  %s701_s28 = sphi %s755_s28, %s908_s28   ;;  %s697_s27 = sphi %s753_s27, %s907_s27   ;;  %s693_s26 = sphi %s751_s26, %s906_s26  }
   0x7   : > { %s776_s8 = sadd.s32 1, %s705_s29   ;;  %s181_s9 = sadd.s32 1, %s701_s28 }
   0x8   : > { %s178_s10 = ssub.s32 %s705_s29, %s776_s8  ;;  %p191_p0 = scmp.ne.s32.totalorder %s701_s28, %s697_s27 }
   0x9   : > { %p179_p1 = scmp.eq.s32.totalorder %s178_s10, 0  ;;  %p192_p2 = scmp.eq.s32.totalorder %s772_s6, 2 }
   0xa   : > { %p197_p3 = scmp.ne.s32.totalorder %s697_s27, %s693_s26  ;;  %p198_p4 = scmp.eq.s32.totalorder %s546_s30, 2 }
   0xb   : > { %s787_s11 = scalar_select %p179_p1, %s701_s28, %s181_s9  }
   0xc   : > { %p789_p5 = por %p192_p2, %p191_p0  ;;  %p793_p6 = por %p198_p4, %p197_p3 }
   0xd   : > { %p549_p7 = scmp.ge.s32.totalorder %s705_s29, 1  ;;  %p240_p8 = scmp.lt.s32.totalorder %s705_s29, 4 }
   0xf   : > { %p241_p9 = pnand %p549_p7, %p240_p8 }
  0x10   : > { %p269_p10 = scmp.lt.s32.totalorder (!%p241_p9), %s772_s6, 2  ;;  %s267_s22 = sand.u32 (!%p241_p9), 1, %s697_s27  }
  0x11   : > { %244 = sbr.rel (%p241_p9) target bundleno = 481 (0x1e1), region = 48  ;;  %s490_s30 = scalar_lea.hbm (!%p241_p9), %s903_s7, %s772_s6 }
  0x12   : > { %s268_s9 = scalar_lea.vmem (!%p241_p9), [#allocation3], %s267_s22  ;;  %s494_s10 = sshll.u32 (!%p241_p9), %s490_s30, 4  ;;  %s495_s10 = int_to_ptr.hbm [resolvable:$true] %s494_s10 }
  0x13   : > { %s482_s14 = scalar_lea.sflag (!%p241_p9), [#allocation4], %s267_s22  ;;  %s657_s15 = sshra.s32 (!%p241_p9), %s495_s10, 4  ;;  %s658_s15 = int_to_ptr.hbm [resolvable:$true] %s657_s15 }
  0x14   : > { %s659_s16 = scalar_lea.hbm (!%p241_p9), %s658_s15, 1  ;;  %s663_s18 = scalar_lea.hbm (!%p241_p9), %s903_s7, 3 }
  0x15   : > { %p660_p11 = scmp.ne.s32.totalorder (!%p241_p9), %s658_s15, %s659_s16  ;;  %p664_p0 = scmp.lt.s32.totalorder (!%p241_p9), %s658_s15, %s903_s7 }
  0x16   : > { %v307_v1 = vld [vmem:[%s898_s2 + $0x18] sm:$0x3f]  ;;  %v707_v3 = vmov 0   ;;  %v306_v4 = vld [vmem:[%s898_s2 + $0x10] sm:$0xff]  ;;  %s270_s20 = scalar_select %p269_p10, %s772_s6, 2  ;;  %v274_v6 = vld [vmem:[%s897_s1 + $0x8] sm:$0xff] }
  0x17   : > { %v276_v2 = vld [vmem:[%s897_s1 + $0x18] sm:$0x3f]  ;;  %608 = vset.pattern.permute.xlu1 %v707_v3  ;;  %607 = vset.pattern.permute.xlu0 %v707_v3  ;;  %v275_v5 = vld [vmem:[%s897_s1 + $0x10] sm:$0xff]  ;;  %v273_v7 = vld [vmem:[%s897_s1] sm:$0xff]  ;;  %vm393_vm0 = vcmask 1045504   ;;  %vm380_vm1 = vcmask 244736   ;;  %p661_p12 = pnand %p660_p11, %p789_p5  ;;  %p665_p1 = scmp.lt.s32.totalorder %s663_s18, %s659_s16 }
  0x18   : > { %325 = vperm.xlu1 %608, %v307_v1   ;;  %294 = vperm.xlu0 %607, %v276_v2   ;;  %s271_s23 = scalar_lea.vmem %s896_s0, %s270_s20  ;;  %v305_v8 = vld [vmem:[%s898_s2 + $0x8] sm:$0xff]  ;;  %v304_v9 = vld [vmem:[%s898_s2] sm:$0xff]  ;;  %v359_v10 = vld [vmem:[%s900_s4 + $0x18] sm:$0x3f] }
  0x19   : > { %609 = vset.pattern.permute.xlu2 %v707_v3  ;;  %v358_v11 = vld [vmem:[%s900_s4 + $0x10] sm:$0xff]  ;;  %v357_v12 = vld [vmem:[%s900_s4 + $0x8] sm:$0xff]  ;;  %v356_v13 = vld [vmem:[%s900_s4] sm:$0xff]  ;;  %p662_p13 = pneg %p661_p12  ;;  %p666_p2 = por %p665_p1, %p664_p0 }
  0x1a   : > { %320 = vperm.xlu2 %609, %v306_v4   ;;  %v447_v14 = vld [vmem:[#allocation2] sm:$0x1]  ;;  %v353_v53 = vld [vmem:[%s899_s3 + $0x8] sm:$0xff]  ;;  %v354_v54 = vld [vmem:[%s899_s3 + $0x10] sm:$0xff] }
  0x1b   : > { %v610_v15 = vld [vmem:[%s271_s23] ss:$0 sm:$0xff]  ;;  %v355_v55 = vld [vmem:[%s899_s3 + $0x18] sm:$0x3f]  ;;  %s492_s23 = sshll.u32 %s268_s9, 4  ;;  %p667_p3 = pnand %p666_p2, %p662_p13  ;;  %s493_s23 = int_to_ptr.vmem [resolvable:$true] %s492_s23 }
  0x1c   : > { %v352_v51 = vld [vmem:[%s899_s3] sm:$0xff] }
  0x20   : > { %289 = vperm.xlu0 %607, %v275_v5   ;;  %284 = vperm.xlu1 %608, %v274_v6  }
  0x22   : > { %279 = vperm.xlu2 %609, %v273_v7  }
  0x28   : > { %315 = vperm.xlu0 %607, %v305_v8   ;;  %310 = vperm.xlu1 %608, %v304_v9  }
  0x2a   : > { %377 = vperm.xlu2 %609, %v359_v10  }
  0x30   : > { %372 = vperm.xlu0 %607, %v358_v11   ;;  %367 = vperm.xlu1 %608, %v357_v12  }
  0x32   : > { %362 = vperm.xlu2 %609, %v356_v13  }
  0x38   : > { %450 = vperm.xlu0 %607, %v447_v14  }
  0x74   : > { %v321_v20 = vpop.permute.xlu2 %320 }
  0x7c   : > { %v280_v28 = vpop.permute.xlu2 %279 }
  0x7d   : > { %v300_v30 = vmul.f32 %v610_v15, %v280_v28 }
  0x84   : > { %v378_v56 = vpop.permute.xlu2 %377 }
  0x8a   : > { %v326_v16 = vpop.permute.xlu1 %325  ;;  %v295_v17 = vpop.permute.xlu0 %294 }
  0x8b   : > { %v303_v18 = vmul.f32 %v610_v15, %v295_v17 }
  0x8c   : > { %v363_v0 = vpop.permute.xlu2 %362 }
  0x8d   : > { %v331_v19 = vadd.f32 %v326_v16, %v303_v18 }
  0x8f   : > { %v335_v21 = vsub.f32 0.0, %v331_v19 }
  0x91   : > { %v342_v22 = vmul.f32 1.442695, %v335_v21 }
  0x92   : > { %v290_v23 = vpop.permute.xlu0 %289  ;;  %v285_v24 = vpop.permute.xlu1 %284 }
  0x93   : > { %611 = vpow2.f32 %v342_v22  ;;  %v302_v25 = vmul.f32 %v610_v15, %v290_v23  ;;  %v301_v32 = vmul.f32 %v610_v15, %v285_v24  ;;  %v446_v23 = vld [vmem:[%s901_s5] sm:$0x1] }
  0x95   : > { %v330_v26 = vadd.f32 %v321_v20, %v302_v25 }
  0x97   : > { %v334_v27 = vsub.f32 0.0, %v330_v26 }
  0x99   : > { %v612_v29 = vpop.eup %611  ;;  %v340_v31 = vmul.f32 1.442695, %v334_v27 }
  0x9a   : > { %v347_v33 = vadd.f32 1.0, %v612_v29  ;;  %v316_v34 = vpop.permute.xlu0 %315  ;;  %v311_v35 = vpop.permute.xlu1 %310 }
  0x9b   : > { %613 = vpow2.f32 %v340_v31  ;;  %v329_v36 = vadd.f32 %v316_v34, %v301_v32  ;;  %v328_v37 = vadd.f32 %v311_v35, %v300_v30 }
  0x9c   : > { %615 = vrcp.f32 %v347_v33 }
  0x9d   : > { %v333_v38 = vsub.f32 0.0, %v329_v36  ;;  %v332_v39 = vsub.f32 0.0, %v328_v37 }
  0x9f   : > { %v338_v40 = vmul.f32 1.442695, %v333_v38  ;;  %v336_v41 = vmul.f32 1.442695, %v332_v39 }
  0xa1   : > { %v614_v42 = vpop.eup %613  ;;  %617 = vpow2.f32 %v338_v40 }
  0xa2   : > { %v616_v43 = vpop.eup %615  ;;  %v346_v44 = vadd.f32 1.0, %v614_v42  ;;  %619 = vpow2.f32 %v336_v41  ;;  %v373_v57 = vpop.permute.xlu0 %372 }
  0xa3   : > { %550 = vmatpush.msk.msra.mxu0 %vm393_vm0, %v616_v43  ;;  %559 = vmatpush.msk.msra.mxu2 %vm393_vm0, %v616_v43  ;;  %v368_v60 = vpop.permute.xlu1 %367 }
  0xa4   : > { %621 = vrcp.f32 %v346_v44  ;;  %560 = vmatpush.msk.msra.mxu3 %vm393_vm0, %v616_v43 }
  0xa7   : > { %v618_v45 = vpop.eup %617 }
  0xa8   : > { %v620_v46 = vpop.eup %619  ;;  %v345_v47 = vadd.f32 1.0, %v618_v45 }
  0xa9   : > { %v344_v48 = vadd.f32 1.0, %v620_v46 }
  0xaa   : > { %v622_v49 = vpop.eup %621  ;;  %623 = vrcp.f32 %v345_v47  ;;  %v451_v25 = vpop.permute.xlu0 %450 }
  0xab   : > { %410 = vmatpush.msra.mxu0 %v622_v49  ;;  %561 = vmatpush.msra.mxu2 %v622_v49  ;;  %625 = vrcp.f32 %v344_v48  ;;  %v453_v26 = vperm.slane %v451_v25, 0 }
  0xac   : > { %562 = vmatpush.msra.mxu3 %v622_v49 }
  0xb0   : > { %v624_v50 = vpop.eup %623 }
  0xb1   : > { %411 = vmatpush.msra.mxu0 %v624_v50  ;;  %563 = vmatpush.msra.mxu2 %v624_v50  ;;  %v626_v52 = vpop.eup %625 }
  0xb2   : > { %564 = vmatpush.msra.mxu3 %v624_v50 }
  0xb3   : > { %412 = vmatpush.msra.mxu0 %v626_v52  ;;  %565 = vmatpush.msra.mxu2 %v626_v52 }
  0xb4   : > { %566 = vmatpush.msra.mxu3 %v626_v52  ;;  %551 = vmatmul.msk.f32.vlgmr.msra.gmra.mxu0 %vm380_vm1, %v352_v51 }
  0xb5   : > { %552 = vmatmul.msk.f32.vlgmr.msra.gmra.mxu2 %vm380_vm1, %v353_v53  ;;  %553 = vmatmul.msk.f32.vlgmr.msra.gmra.mxu3 %vm380_vm1, %v354_v54 }
  0xbd   : > { %554 = vmatmul.msk.f32.gmra.mxu3 %vm380_vm1, %v355_v55 }
 0x131   : > { %v414_v62 = vpop.f32.mrf.mxu0 }
 0x132   : > { %v415_v1 = vadd.f32 %v414_v62, %v363_v0 }
 0x134   : > { %v426_v5 = vsub.f32 0.0, %v415_v1 }
 0x136   : > { %v430_v10 = vmul.f32 1.442695, %v426_v5 }
 0x138   : > { %v417_v58 = vpop.f32.mrf.mxu2  ;;  %v420_v59 = vpop.f32.mrf.mxu3 }
 0x139   : > { %v421_v61 = vadd.f32 %v420_v59, %v373_v57  ;;  %v418_v63 = vadd.f32 %v417_v58, %v368_v60 }
 0x13b   : > { %v428_v2 = vsub.f32 0.0, %v421_v61  ;;  %v427_v3 = vsub.f32 0.0, %v418_v63 }
 0x13d   : > { %v434_v6 = vmul.f32 1.442695, %v428_v2  ;;  %v432_v8 = vmul.f32 1.442695, %v427_v3 }
 0x13f   : > { %627 = vpow2.f32 %v434_v6 }
 0x140   : > { %v423_v4 = vpop.f32.mrf.mxu3  ;;  %629 = vpow2.f32 %v432_v8 }
 0x141   : > { %v424_v7 = vadd.f32 %v423_v4, %v378_v56 }
 0x143   : > { %v429_v9 = vsub.f32 0.0, %v424_v7 }
 0x145   : > { %v436_v11 = vmul.f32 1.442695, %v429_v9  ;;  %v628_v12 = vpop.eup %627 }
 0x146   : > { %v630_v13 = vpop.eup %629  ;;  %v440_v15 = vadd.f32 1.0, %v628_v12 }
 0x147   : > { %631 = vpow2.f32 %v436_v11  ;;  %v439_v18 = vadd.f32 1.0, %v630_v13 }
 0x148   : > { %633 = vpow2.f32 %v430_v10 }
 0x14d   : > { %v632_v14 = vpop.eup %631 }
 0x14e   : > { %v441_v16 = vadd.f32 1.0, %v632_v14  ;;  %v634_v17 = vpop.eup %633 }
 0x14f   : > { %v438_v19 = vadd.f32 1.0, %v634_v17 }
 0x150   : > { %635 = vrcp.f32 %v441_v16 }
 0x151   : > { %637 = vrcp.f32 %v440_v15 }
 0x152   : > { %639 = vrcp.f32 %v439_v18 }
 0x153   : > { %641 = vrcp.f32 %v438_v19 }
 0x156   : > { %v636_v20 = vpop.eup %635 }
 0x157   : > { %555 = vmatpush.msk.msra.mxu1 %vm393_vm0, %v636_v20  ;;  %v638_v21 = vpop.eup %637 }
 0x158   : > { %v640_v22 = vpop.eup %639 }
 0x159   : > { %473 = vmatpush.msra.mxu1 %v638_v21  ;;  %v642_v24 = vpop.eup %641 }
 0x15b   : > { %474 = vmatpush.msra.mxu1 %v640_v22 }
 0x15d   : > { %475 = vmatpush.msra.mxu1 %v642_v24 }
 0x15e   : > { %556 = vmatmul.msk.f32.vlgmr.msra.gmra.mxu1 %vm380_vm1, %v446_v23 }
 0x1db   : > { %v477_v27 = vpop.f32.mrf.mxu1 }
 0x1dc   : > { %v478_v28 = vadd.f32 %v477_v27, %v453_v26 }
 0x1de   : > { %480 = vst [vmem:[%s268_s9] sm:$0x1] %v478_v28 }
 0x1df   : > { %670 = shalt.err (!%p667_p3)
}
 0x1e0   : > { %567 = dma.vmem_to_hbm [thread:$0]  (%p789_p5), %s493_s23, 16, %s495_s10, %s482_s14  }
 0x1e1 PF: > { %p573_p4 = scmp.ge.s32.totalorder %s705_s29, 2  ;;  %s506_s21 = sand.u32 1, %s693_s26  }
 0x1e2   : > { %s507_s22 = scalar_lea.sflag [#allocation4], %s506_s21 }
 0x1e3   : > { %p570_p7 = pnand %p573_p4, %p793_p6 }
 0x1e5   : > { %p571_p8 = pneg %p570_p7 }
 0x1e7   : > { %688 = dma.done.wait (%p571_p8), %s507_s22, 16  }
 0x1e8   : > { %690 = vsyncadd (%p571_p8), %s507_s22, 4294967280  ;;  %p19_p9 = scmp.ge.s32.totalorder %s776_s8, 5   ;;  %s906_s26 = smov %s697_s27 }
 0x1e9   : > { %s907_s27 = smov %s701_s28  ;;  %s908_s28 = smov %s787_s11 }
 0x1ea   : > { %s909_s29 = smov %s776_s8  ;;  %21 = sbr.rel (!%p19_p9) target bundleno = 6 (0x6), region = 83 }
 0x1ef   :  { %512 = vsyncpa [#allocation4], 1 }
 0x1f0   :  { %514 = vsyncpa [#allocation4 + $0x1], 1 }

</bundles_post_ra>
